<compile_context>
chip_gen: v6e
topology: v6e:2x2x1
jax: 0.10.0
libtpu: 0.0.40
codegen_flags: <defaults>
</compile_context>

<pallas_src>
import functools

import jax
import jax.numpy as jnp
from jax.experimental import pallas as pl
from jax.experimental.pallas import tpu as pltpu

THRESHOLD = 1.0


def _net_kernel(x_ref, w1_ref, b1_ref, w2_ref, b2_ref,
                spk2_ref, mem2_ref, spk1_slab_ref,
                *, num_steps, beta):
    # --- Hoisted, time-invariant fc1: computed once for all steps. ---------
    cur1 = jnp.dot(x_ref[...], w1_ref[...],
                   preferred_element_type=jnp.float32) + b1_ref[...]

    w2 = w2_ref[...]
    b2 = b2_ref[...]

    B, NH = cur1.shape
    NO = w2.shape[1]
    # Rows-per-step inside the spk1 slab (padded to a multiple of 8 so every
    # per-step store lands at a tile-aligned sublane offset).
    BP = spk1_slab_ref.shape[0] // num_steps

    # Zero the slab once so padding rows feed zeros (their matmul output rows
    # are never read, but keep everything finite and deterministic).
    spk1_slab_ref[...] = jnp.zeros_like(spk1_slab_ref)

    # --- Layer-1 LIF recurrence (serial over time); collect spk1_t. --------
    mem1 = jnp.zeros((B, NH), jnp.float32)
    for t in range(num_steps):
        leak1 = beta * mem1 + cur1
        mem1 = jnp.where(mem1 > THRESHOLD, leak1 - THRESHOLD, leak1)
        spk1 = (mem1 > THRESHOLD).astype(jnp.float32)
        # Static, tile-aligned sublane offset (t * BP is a multiple of 8).
        spk1_slab_ref[t * BP:t * BP + B, :] = spk1

    # --- Batched fc2 across ALL time steps: ONE MXU matmul + one bias add. --
    cur2_all = jnp.dot(spk1_slab_ref[...], w2,
                       preferred_element_type=jnp.float32) + b2

    # --- Layer-2 LIF recurrence over precomputed currents; record. ---------
    mem2 = jnp.zeros((B, NO), jnp.float32)
    for t in range(num_steps):
        cur2 = cur2_all[t * BP:t * BP + B, :]        # static, aligned slice
        leak2 = beta * mem2 + cur2
        mem2 = jnp.where(mem2 > THRESHOLD, leak2 - THRESHOLD, leak2)
        spk2 = (mem2 > THRESHOLD).astype(jnp.float32)
        # Lane-dense recording: step t occupies lanes [t*NO, (t+1)*NO) of the
        # (B, num_steps*NO) output refs; static offsets, single dense HBM
        # writeback per output at kernel exit.
        spk2_ref[:, t * NO:(t + 1) * NO] = spk2
        mem2_ref[:, t * NO:(t + 1) * NO] = mem2


def net_forward(x, w1_t, b1, w2_t, b2, *, num_steps, beta):
    """x: (B, num_inputs) f32. Weights passed pre-transposed:
    w1_t = W1.T (num_inputs, num_hidden), w2_t = W2.T (num_hidden, num_outputs).
    Returns (spk2_rec, mem2_rec), each (num_steps, B, num_outputs) f32."""
    B, _ = x.shape
    NH = w1_t.shape[1]
    NO = w2_t.shape[1]
    BP = ((B + 7) // 8) * 8   # per-step row stride in the spk1 slab (aligned)

    kernel = functools.partial(_net_kernel,
                               num_steps=int(num_steps), beta=float(beta))

    out_shapes = (
        jax.ShapeDtypeStruct((B, num_steps * NO), jnp.float32),  # spk2 packed
        jax.ShapeDtypeStruct((B, num_steps * NO), jnp.float32),  # mem2 packed
    )

    vmem = pltpu.MemorySpace.VMEM
    # Single invocation (no grid): all operands, the spk1 slab and both
    # recording buffers live entirely in VMEM for the duration of the kernel.
    spk2_p, mem2_p = pl.pallas_call(
        kernel,
        out_shape=out_shapes,
        in_specs=[
            pl.BlockSpec(memory_space=vmem),  # x
            pl.BlockSpec(memory_space=vmem),  # W1^T
            pl.BlockSpec(memory_space=vmem),  # b1
            pl.BlockSpec(memory_space=vmem),  # W2^T
            pl.BlockSpec(memory_space=vmem),  # b2
        ],
        out_specs=(
            pl.BlockSpec(memory_space=vmem),  # spk2_rec (packed)
            pl.BlockSpec(memory_space=vmem),  # mem2_rec (packed)
        ),
        scratch_shapes=[
            pltpu.VMEM((num_steps * BP, NH), jnp.float32),  # spk1 slab
        ],
    )(x, w1_t, b1, w2_t, b2)

    # (B, num_steps*NO) -> (num_steps, B, NO)
    spk2_rec = spk2_p.reshape(B, num_steps, NO).transpose(1, 0, 2)
    mem2_rec = mem2_p.reshape(B, num_steps, NO).transpose(1, 0, 2)
    return spk2_rec, mem2_rec


def _reference(x, w1_t, b1, w2_t, b2, num_steps, beta):
    """Pure-JAX reference mirroring snn.Leaky (subtract reset)."""
    B = x.shape[0]
    NH = w1_t.shape[1]
    NO = w2_t.shape[1]
    mem1 = jnp.zeros((B, NH), jnp.float32)
    mem2 = jnp.zeros((B, NO), jnp.float32)
    spk_rec, mem_rec = [], []
    for _ in range(num_steps):
        cur1 = x @ w1_t + b1
        reset1 = (mem1 > THRESHOLD).astype(jnp.float32)
        mem1 = beta * mem1 + cur1 - reset1 * THRESHOLD
        spk1 = (mem1 > THRESHOLD).astype(jnp.float32)
        cur2 = spk1 @ w2_t + b2
        reset2 = (mem2 > THRESHOLD).astype(jnp.float32)
        mem2 = beta * mem2 + cur2 - reset2 * THRESHOLD
        spk2 = (mem2 > THRESHOLD).astype(jnp.float32)
        spk_rec.append(spk2)
        mem_rec.append(mem2)
    return jnp.stack(spk_rec, 0), jnp.stack(mem_rec, 0)


if __name__ == "__main__":
    # Small, self-consistent shapes.
    batch = 4
    num_inputs = 32
    num_hidden = 64
    num_outputs = 16
    num_steps = 8
    beta = 0.9

    key = jax.random.PRNGKey(0)
    kx, kw1, kb1, kw2, kb2 = jax.random.split(key, 5)

    # Deterministic params mimicking nn.Linear init: U(-1/sqrt(fan_in), +).
    lim1 = 1.0 / jnp.sqrt(num_inputs)
    lim2 = 1.0 / jnp.sqrt(num_hidden)
    w1_t = jax.random.uniform(kw1, (num_inputs, num_hidden), jnp.float32,
                              -lim1, lim1)          # = W1.T
    b1 = jax.random.uniform(kb1, (1, num_hidden), jnp.float32, -lim1, lim1)
    w2_t = jax.random.uniform(kw2, (num_hidden, num_outputs), jnp.float32,
                              -lim2, lim2)          # = W2.T
    b2 = jax.random.uniform(kb2, (1, num_outputs), jnp.float32, -lim2, lim2)

    x = jax.random.uniform(kx, (batch, num_inputs), jnp.float32) * 2.0

    spk2_rec, mem2_rec = net_forward(x, w1_t, b1, w2_t, b2,
                                     num_steps=num_steps, beta=beta)
    jax.block_until_ready((spk2_rec, mem2_rec))

    spk_ref, mem_ref = _reference(x, w1_t, b1, w2_t, b2, num_steps, beta)
    assert spk2_rec.shape == (num_steps, batch, num_outputs)
    assert mem2_rec.shape == (num_steps, batch, num_outputs)
    assert jnp.allclose(spk2_rec, spk_ref, atol=1e-5)
    assert jnp.allclose(mem2_rec, mem_ref, atol=1e-5)

    print("KERNEL_OK")
</pallas_src>

<mosaic_0001>
module attributes {stable_mosaic.version = 11 : i64} {
  func.func @_net_kernel(%arg0: memref<4x32xf32, #tpu.memory_space<vmem>>, %arg1: memref<32x64xf32, #tpu.memory_space<vmem>>, %arg2: memref<1x64xf32, #tpu.memory_space<vmem>>, %arg3: memref<64x16xf32, #tpu.memory_space<vmem>>, %arg4: memref<1x16xf32, #tpu.memory_space<vmem>>, %arg5: memref<4x128xf32, #tpu.memory_space<vmem>>, %arg6: memref<4x128xf32, #tpu.memory_space<vmem>>, %arg7: memref<64x64xf32, #tpu.memory_space<vmem>>) attributes {dimension_semantics = [], scalar_prefetch = 0 : i64, scratch_operands = 1 : i64, tpu.core_type = #tpu.core_type<tc>} {
    %c0 = arith.constant 0 : index
    %c0_0 = arith.constant 0 : index
    %0 = vector.load %arg0[%c0, %c0_0] : memref<4x32xf32, #tpu.memory_space<vmem>>, vector<4x32xf32>
    %c0_1 = arith.constant 0 : index
    %c0_2 = arith.constant 0 : index
    %1 = vector.load %arg1[%c0_1, %c0_2] : memref<32x64xf32, #tpu.memory_space<vmem>>, vector<32x64xf32>
    %cst = arith.constant dense<0.000000e+00> : vector<4x64xf32>
    %2 = tpu.matmul %0, %1, %cst {dimension_numbers = #tpu.dot_dimension_numbers<[1], [0], [0], [1], [0, 0, 1, 1], [], []>} : vector<4x32xf32>, vector<32x64xf32>, vector<4x64xf32> -> vector<4x64xf32>
    %c0_3 = arith.constant 0 : index
    %c0_4 = arith.constant 0 : index
    %3 = vector.load %arg2[%c0_3, %c0_4] : memref<1x64xf32, #tpu.memory_space<vmem>>, vector<1x64xf32>
    %4 = vector.broadcast %3 : vector<1x64xf32> to vector<4x64xf32>
    %5 = arith.addf %2, %4 : vector<4x64xf32>
    %c0_5 = arith.constant 0 : index
    %c0_6 = arith.constant 0 : index
    %6 = vector.load %arg3[%c0_5, %c0_6] : memref<64x16xf32, #tpu.memory_space<vmem>>, vector<64x16xf32>
    %c0_7 = arith.constant 0 : index
    %c0_8 = arith.constant 0 : index
    %7 = vector.load %arg4[%c0_7, %c0_8] : memref<1x16xf32, #tpu.memory_space<vmem>>, vector<1x16xf32>
    %cst_9 = arith.constant 0.000000e+00 : f32
    %8 = vector.broadcast %cst_9 : f32 to vector<64x64xf32>
    %c0_10 = arith.constant 0 : index
    %c0_11 = arith.constant 0 : index
    %9 = vector.load %arg7[%c0_10, %c0_11] : memref<64x64xf32, #tpu.memory_space<vmem>>, vector<64x64xf32>
    tpu.vector_store %arg7[%c0_10, %c0_11], %8 {strides = array<i32>} : memref<64x64xf32, #tpu.memory_space<vmem>>, vector<64x64xf32>,
    %cst_12 = arith.constant 0.000000e+00 : f32
    %10 = vector.broadcast %cst_12 : f32 to vector<4x64xf32>
    %cst_13 = arith.constant 0.899999976 : f32
    %11 = vector.broadcast %cst_13 : f32 to vector<4x64xf32>
    %12 = arith.mulf %11, %10 : vector<4x64xf32>
    %13 = arith.addf %12, %5 : vector<4x64xf32>
    %cst_14 = arith.constant 1.000000e+00 : f32
    %14 = vector.broadcast %cst_14 : f32 to vector<4x64xf32>
    %15 = arith.cmpf ogt, %10, %14 : vector<4x64xf32>
    %cst_15 = arith.constant 1.000000e+00 : f32
    %16 = vector.broadcast %cst_15 : f32 to vector<4x64xf32>
    %17 = arith.subf %13, %16 : vector<4x64xf32>
    %18 = arith.select %15, %17, %13 : vector<4x64xi1>, vector<4x64xf32>
    %cst_16 = arith.constant 1.000000e+00 : f32
    %19 = vector.broadcast %cst_16 : f32 to vector<4x64xf32>
    %20 = arith.cmpf ogt, %18, %19 : vector<4x64xf32>
    %21 = arith.extui %20 : vector<4x64xi1> to vector<4x64xi32>
    %22 = arith.sitofp %21 : vector<4x64xi32> to vector<4x64xf32>
    %c0_17 = arith.constant 0 : index
    %c0_18 = arith.constant 0 : index
    %23 = vector.load %arg7[%c0_17, %c0_18] : memref<64x64xf32, #tpu.memory_space<vmem>>, vector<4x64xf32>
    tpu.vector_store %arg7[%c0_17, %c0_18], %22 {strides = array<i32>} : memref<64x64xf32, #tpu.memory_space<vmem>>, vector<4x64xf32>,
    %cst_19 = arith.constant 0.899999976 : f32
    %24 = vector.broadcast %cst_19 : f32 to vector<4x64xf32>
    %25 = arith.mulf %24, %18 : vector<4x64xf32>
    %26 = arith.addf %25, %5 : vector<4x64xf32>
    %cst_20 = arith.constant 1.000000e+00 : f32
    %27 = vector.broadcast %cst_20 : f32 to vector<4x64xf32>
    %28 = arith.cmpf ogt, %18, %27 : vector<4x64xf32>
    %cst_21 = arith.constant 1.000000e+00 : f32
    %29 = vector.broadcast %cst_21 : f32 to vector<4x64xf32>
    %30 = arith.subf %26, %29 : vector<4x64xf32>
    %31 = arith.select %28, %30, %26 : vector<4x64xi1>, vector<4x64xf32>
    %cst_22 = arith.constant 1.000000e+00 : f32
    %32 = vector.broadcast %cst_22 : f32 to vector<4x64xf32>
    %33 = arith.cmpf ogt, %31, %32 : vector<4x64xf32>
    %34 = arith.extui %33 : vector<4x64xi1> to vector<4x64xi32>
    %35 = arith.sitofp %34 : vector<4x64xi32> to vector<4x64xf32>
    %c8 = arith.constant 8 : index
    %c0_23 = arith.constant 0 : index
    %36 = vector.load %arg7[%c8, %c0_23] : memref<64x64xf32, #tpu.memory_space<vmem>>, vector<4x64xf32>
    tpu.vector_store %arg7[%c8, %c0_23], %35 {strides = array<i32>} : memref<64x64xf32, #tpu.memory_space<vmem>>, vector<4x64xf32>,
    %cst_24 = arith.constant 0.899999976 : f32
    %37 = vector.broadcast %cst_24 : f32 to vector<4x64xf32>
    %38 = arith.mulf %37, %31 : vector<4x64xf32>
    %39 = arith.addf %38, %5 : vector<4x64xf32>
    %cst_25 = arith.constant 1.000000e+00 : f32
    %40 = vector.broadcast %cst_25 : f32 to vector<4x64xf32>
    %41 = arith.cmpf ogt, %31, %40 : vector<4x64xf32>
    %cst_26 = arith.constant 1.000000e+00 : f32
    %42 = vector.broadcast %cst_26 : f32 to vector<4x64xf32>
    %43 = arith.subf %39, %42 : vector<4x64xf32>
    %44 = arith.select %41, %43, %39 : vector<4x64xi1>, vector<4x64xf32>
    %cst_27 = arith.constant 1.000000e+00 : f32
    %45 = vector.broadcast %cst_27 : f32 to vector<4x64xf32>
    %46 = arith.cmpf ogt, %44, %45 : vector<4x64xf32>
    %47 = arith.extui %46 : vector<4x64xi1> to vector<4x64xi32>
    %48 = arith.sitofp %47 : vector<4x64xi32> to vector<4x64xf32>
    %c16 = arith.constant 16 : index
    %c0_28 = arith.constant 0 : index
    %49 = vector.load %arg7[%c16, %c0_28] : memref<64x64xf32, #tpu.memory_space<vmem>>, vector<4x64xf32>
    tpu.vector_store %arg7[%c16, %c0_28], %48 {strides = array<i32>} : memref<64x64xf32, #tpu.memory_space<vmem>>, vector<4x64xf32>,
    %cst_29 = arith.constant 0.899999976 : f32
    %50 = vector.broadcast %cst_29 : f32 to vector<4x64xf32>
    %51 = arith.mulf %50, %44 : vector<4x64xf32>
    %52 = arith.addf %51, %5 : vector<4x64xf32>
    %cst_30 = arith.constant 1.000000e+00 : f32
    %53 = vector.broadcast %cst_30 : f32 to vector<4x64xf32>
    %54 = arith.cmpf ogt, %44, %53 : vector<4x64xf32>
    %cst_31 = arith.constant 1.000000e+00 : f32
    %55 = vector.broadcast %cst_31 : f32 to vector<4x64xf32>
    %56 = arith.subf %52, %55 : vector<4x64xf32>
    %57 = arith.select %54, %56, %52 : vector<4x64xi1>, vector<4x64xf32>
    %cst_32 = arith.constant 1.000000e+00 : f32
    %58 = vector.broadcast %cst_32 : f32 to vector<4x64xf32>
    %59 = arith.cmpf ogt, %57, %58 : vector<4x64xf32>
    %60 = arith.extui %59 : vector<4x64xi1> to vector<4x64xi32>
    %61 = arith.sitofp %60 : vector<4x64xi32> to vector<4x64xf32>
    %c24 = arith.constant 24 : index
    %c0_33 = arith.constant 0 : index
    %62 = vector.load %arg7[%c24, %c0_33] : memref<64x64xf32, #tpu.memory_space<vmem>>, vector<4x64xf32>
    tpu.vector_store %arg7[%c24, %c0_33], %61 {strides = array<i32>} : memref<64x64xf32, #tpu.memory_space<vmem>>, vector<4x64xf32>,
    %cst_34 = arith.constant 0.899999976 : f32
    %63 = vector.broadcast %cst_34 : f32 to vector<4x64xf32>
    %64 = arith.mulf %63, %57 : vector<4x64xf32>
    %65 = arith.addf %64, %5 : vector<4x64xf32>
    %cst_35 = arith.constant 1.000000e+00 : f32
    %66 = vector.broadcast %cst_35 : f32 to vector<4x64xf32>
    %67 = arith.cmpf ogt, %57, %66 : vector<4x64xf32>
    %cst_36 = arith.constant 1.000000e+00 : f32
    %68 = vector.broadcast %cst_36 : f32 to vector<4x64xf32>
    %69 = arith.subf %65, %68 : vector<4x64xf32>
    %70 = arith.select %67, %69, %65 : vector<4x64xi1>, vector<4x64xf32>
    %cst_37 = arith.constant 1.000000e+00 : f32
    %71 = vector.broadcast %cst_37 : f32 to vector<4x64xf32>
    %72 = arith.cmpf ogt, %70, %71 : vector<4x64xf32>
    %73 = arith.extui %72 : vector<4x64xi1> to vector<4x64xi32>
    %74 = arith.sitofp %73 : vector<4x64xi32> to vector<4x64xf32>
    %c32 = arith.constant 32 : index
    %c0_38 = arith.constant 0 : index
    %75 = vector.load %arg7[%c32, %c0_38] : memref<64x64xf32, #tpu.memory_space<vmem>>, vector<4x64xf32>
    tpu.vector_store %arg7[%c32, %c0_38], %74 {strides = array<i32>} : memref<64x64xf32, #tpu.memory_space<vmem>>, vector<4x64xf32>,
    %cst_39 = arith.constant 0.899999976 : f32
    %76 = vector.broadcast %cst_39 : f32 to vector<4x64xf32>
    %77 = arith.mulf %76, %70 : vector<4x64xf32>
    %78 = arith.addf %77, %5 : vector<4x64xf32>
    %cst_40 = arith.constant 1.000000e+00 : f32
    %79 = vector.broadcast %cst_40 : f32 to vector<4x64xf32>
    %80 = arith.cmpf ogt, %70, %79 : vector<4x64xf32>
    %cst_41 = arith.constant 1.000000e+00 : f32
    %81 = vector.broadcast %cst_41 : f32 to vector<4x64xf32>
    %82 = arith.subf %78, %81 : vector<4x64xf32>
    %83 = arith.select %80, %82, %78 : vector<4x64xi1>, vector<4x64xf32>
    %cst_42 = arith.constant 1.000000e+00 : f32
    %84 = vector.broadcast %cst_42 : f32 to vector<4x64xf32>
    %85 = arith.cmpf ogt, %83, %84 : vector<4x64xf32>
    %86 = arith.extui %85 : vector<4x64xi1> to vector<4x64xi32>
    %87 = arith.sitofp %86 : vector<4x64xi32> to vector<4x64xf32>
    %c40 = arith.constant 40 : index
    %c0_43 = arith.constant 0 : index
    %88 = vector.load %arg7[%c40, %c0_43] : memref<64x64xf32, #tpu.memory_space<vmem>>, vector<4x64xf32>
    tpu.vector_store %arg7[%c40, %c0_43], %87 {strides = array<i32>} : memref<64x64xf32, #tpu.memory_space<vmem>>, vector<4x64xf32>,
    %cst_44 = arith.constant 0.899999976 : f32
    %89 = vector.broadcast %cst_44 : f32 to vector<4x64xf32>
    %90 = arith.mulf %89, %83 : vector<4x64xf32>
    %91 = arith.addf %90, %5 : vector<4x64xf32>
    %cst_45 = arith.constant 1.000000e+00 : f32
    %92 = vector.broadcast %cst_45 : f32 to vector<4x64xf32>
    %93 = arith.cmpf ogt, %83, %92 : vector<4x64xf32>
    %cst_46 = arith.constant 1.000000e+00 : f32
    %94 = vector.broadcast %cst_46 : f32 to vector<4x64xf32>
    %95 = arith.subf %91, %94 : vector<4x64xf32>
    %96 = arith.select %93, %95, %91 : vector<4x64xi1>, vector<4x64xf32>
    %cst_47 = arith.constant 1.000000e+00 : f32
    %97 = vector.broadcast %cst_47 : f32 to vector<4x64xf32>
    %98 = arith.cmpf ogt, %96, %97 : vector<4x64xf32>
    %99 = arith.extui %98 : vector<4x64xi1> to vector<4x64xi32>
    %100 = arith.sitofp %99 : vector<4x64xi32> to vector<4x64xf32>
    %c48 = arith.constant 48 : index
    %c0_48 = arith.constant 0 : index
    %101 = vector.load %arg7[%c48, %c0_48] : memref<64x64xf32, #tpu.memory_space<vmem>>, vector<4x64xf32>
    tpu.vector_store %arg7[%c48, %c0_48], %100 {strides = array<i32>} : memref<64x64xf32, #tpu.memory_space<vmem>>, vector<4x64xf32>,
    %cst_49 = arith.constant 0.899999976 : f32
    %102 = vector.broadcast %cst_49 : f32 to vector<4x64xf32>
    %103 = arith.mulf %102, %96 : vector<4x64xf32>
    %104 = arith.addf %103, %5 : vector<4x64xf32>
    %cst_50 = arith.constant 1.000000e+00 : f32
    %105 = vector.broadcast %cst_50 : f32 to vector<4x64xf32>
    %106 = arith.cmpf ogt, %96, %105 : vector<4x64xf32>
    %cst_51 = arith.constant 1.000000e+00 : f32
    %107 = vector.broadcast %cst_51 : f32 to vector<4x64xf32>
    %108 = arith.subf %104, %107 : vector<4x64xf32>
    %109 = arith.select %106, %108, %104 : vector<4x64xi1>, vector<4x64xf32>
    %cst_52 = arith.constant 1.000000e+00 : f32
    %110 = vector.broadcast %cst_52 : f32 to vector<4x64xf32>
    %111 = arith.cmpf ogt, %109, %110 : vector<4x64xf32>
    %112 = arith.extui %111 : vector<4x64xi1> to vector<4x64xi32>
    %113 = arith.sitofp %112 : vector<4x64xi32> to vector<4x64xf32>
    %c56 = arith.constant 56 : index
    %c0_53 = arith.constant 0 : index
    %114 = vector.load %arg7[%c56, %c0_53] : memref<64x64xf32, #tpu.memory_space<vmem>>, vector<4x64xf32>
    tpu.vector_store %arg7[%c56, %c0_53], %113 {strides = array<i32>} : memref<64x64xf32, #tpu.memory_space<vmem>>, vector<4x64xf32>,
    %c0_54 = arith.constant 0 : index
    %c0_55 = arith.constant 0 : index
    %115 = vector.load %arg7[%c0_54, %c0_55] : memref<64x64xf32, #tpu.memory_space<vmem>>, vector<64x64xf32>
    %cst_56 = arith.constant dense<0.000000e+00> : vector<64x16xf32>
    %116 = tpu.matmul %115, %6, %cst_56 {dimension_numbers = #tpu.dot_dimension_numbers<[1], [0], [0], [1], [0, 0, 1, 1], [], []>} : vector<64x64xf32>, vector<64x16xf32>, vector<64x16xf32> -> vector<64x16xf32>
    %117 = vector.broadcast %7 : vector<1x16xf32> to vector<64x16xf32>
    %118 = arith.addf %116, %117 : vector<64x16xf32>
    %cst_57 = arith.constant 0.000000e+00 : f32
    %119 = vector.broadcast %cst_57 : f32 to vector<4x16xf32>
    %120 = vector.extract_strided_slice %118 {offsets = [0, 0], sizes = [4, 16], strides = [1, 1]} : vector<64x16xf32> to vector<4x16xf32>
    %cst_58 = arith.constant 0.899999976 : f32
    %121 = vector.broadcast %cst_58 : f32 to vector<4x16xf32>
    %122 = arith.mulf %121, %119 : vector<4x16xf32>
    %123 = arith.addf %122, %120 : vector<4x16xf32>
    %cst_59 = arith.constant 1.000000e+00 : f32
    %124 = vector.broadcast %cst_59 : f32 to vector<4x16xf32>
    %125 = arith.cmpf ogt, %119, %124 : vector<4x16xf32>
    %cst_60 = arith.constant 1.000000e+00 : f32
    %126 = vector.broadcast %cst_60 : f32 to vector<4x16xf32>
    %127 = arith.subf %123, %126 : vector<4x16xf32>
    %128 = arith.select %125, %127, %123 : vector<4x16xi1>, vector<4x16xf32>
    %cst_61 = arith.constant 1.000000e+00 : f32
    %129 = vector.broadcast %cst_61 : f32 to vector<4x16xf32>
    %130 = arith.cmpf ogt, %128, %129 : vector<4x16xf32>
    %131 = arith.extui %130 : vector<4x16xi1> to vector<4x16xi32>
    %132 = arith.sitofp %131 : vector<4x16xi32> to vector<4x16xf32>
    %c0_62 = arith.constant 0 : index
    %c0_63 = arith.constant 0 : index
    %133 = vector.load %arg5[%c0_62, %c0_63] : memref<4x128xf32, #tpu.memory_space<vmem>>, vector<4x16xf32>
    tpu.vector_store %arg5[%c0_62, %c0_63], %132 {strides = array<i32>} : memref<4x128xf32, #tpu.memory_space<vmem>>, vector<4x16xf32>,
    %c0_64 = arith.constant 0 : index
    %c0_65 = arith.constant 0 : index
    %134 = vector.load %arg6[%c0_64, %c0_65] : memref<4x128xf32, #tpu.memory_space<vmem>>, vector<4x16xf32>
    tpu.vector_store %arg6[%c0_64, %c0_65], %128 {strides = array<i32>} : memref<4x128xf32, #tpu.memory_space<vmem>>, vector<4x16xf32>,
    %135 = vector.extract_strided_slice %118 {offsets = [8, 0], sizes = [4, 16], strides = [1, 1]} : vector<64x16xf32> to vector<4x16xf32>
    %cst_66 = arith.constant 0.899999976 : f32
    %136 = vector.broadcast %cst_66 : f32 to vector<4x16xf32>
    %137 = arith.mulf %136, %128 : vector<4x16xf32>
    %138 = arith.addf %137, %135 : vector<4x16xf32>
    %cst_67 = arith.constant 1.000000e+00 : f32
    %139 = vector.broadcast %cst_67 : f32 to vector<4x16xf32>
    %140 = arith.cmpf ogt, %128, %139 : vector<4x16xf32>
    %cst_68 = arith.constant 1.000000e+00 : f32
    %141 = vector.broadcast %cst_68 : f32 to vector<4x16xf32>
    %142 = arith.subf %138, %141 : vector<4x16xf32>
    %143 = arith.select %140, %142, %138 : vector<4x16xi1>, vector<4x16xf32>
    %cst_69 = arith.constant 1.000000e+00 : f32
    %144 = vector.broadcast %cst_69 : f32 to vector<4x16xf32>
    %145 = arith.cmpf ogt, %143, %144 : vector<4x16xf32>
    %146 = arith.extui %145 : vector<4x16xi1> to vector<4x16xi32>
    %147 = arith.sitofp %146 : vector<4x16xi32> to vector<4x16xf32>
    %c0_70 = arith.constant 0 : index
    %c16_71 = arith.constant 16 : index
    %148 = vector.load %arg5[%c0_70, %c16_71] : memref<4x128xf32, #tpu.memory_space<vmem>>, vector<4x16xf32>
    tpu.vector_store %arg5[%c0_70, %c16_71], %147 {strides = array<i32>} : memref<4x128xf32, #tpu.memory_space<vmem>>, vector<4x16xf32>,
    %c0_72 = arith.constant 0 : index
    %c16_73 = arith.constant 16 : index
    %149 = vector.load %arg6[%c0_72, %c16_73] : memref<4x128xf32, #tpu.memory_space<vmem>>, vector<4x16xf32>
    tpu.vector_store %arg6[%c0_72, %c16_73], %143 {strides = array<i32>} : memref<4x128xf32, #tpu.memory_space<vmem>>, vector<4x16xf32>,
    %150 = vector.extract_strided_slice %118 {offsets = [16, 0], sizes = [4, 16], strides = [1, 1]} : vector<64x16xf32> to vector<4x16xf32>
    %cst_74 = arith.constant 0.899999976 : f32
    %151 = vector.broadcast %cst_74 : f32 to vector<4x16xf32>
    %152 = arith.mulf %151, %143 : vector<4x16xf32>
    %153 = arith.addf %152, %150 : vector<4x16xf32>
    %cst_75 = arith.constant 1.000000e+00 : f32
    %154 = vector.broadcast %cst_75 : f32 to vector<4x16xf32>
    %155 = arith.cmpf ogt, %143, %154 : vector<4x16xf32>
    %cst_76 = arith.constant 1.000000e+00 : f32
    %156 = vector.broadcast %cst_76 : f32 to vector<4x16xf32>
    %157 = arith.subf %153, %156 : vector<4x16xf32>
    %158 = arith.select %155, %157, %153 : vector<4x16xi1>, vector<4x16xf32>
    %cst_77 = arith.constant 1.000000e+00 : f32
    %159 = vector.broadcast %cst_77 : f32 to vector<4x16xf32>
    %160 = arith.cmpf ogt, %158, %159 : vector<4x16xf32>
    %161 = arith.extui %160 : vector<4x16xi1> to vector<4x16xi32>
    %162 = arith.sitofp %161 : vector<4x16xi32> to vector<4x16xf32>
    %c0_78 = arith.constant 0 : index
    %c32_79 = arith.constant 32 : index
    %163 = vector.load %arg5[%c0_78, %c32_79] : memref<4x128xf32, #tpu.memory_space<vmem>>, vector<4x16xf32>
    tpu.vector_store %arg5[%c0_78, %c32_79], %162 {strides = array<i32>} : memref<4x128xf32, #tpu.memory_space<vmem>>, vector<4x16xf32>,
    %c0_80 = arith.constant 0 : index
    %c32_81 = arith.constant 32 : index
    %164 = vector.load %arg6[%c0_80, %c32_81] : memref<4x128xf32, #tpu.memory_space<vmem>>, vector<4x16xf32>
    tpu.vector_store %arg6[%c0_80, %c32_81], %158 {strides = array<i32>} : memref<4x128xf32, #tpu.memory_space<vmem>>, vector<4x16xf32>,
    %165 = vector.extract_strided_slice %118 {offsets = [24, 0], sizes = [4, 16], strides = [1, 1]} : vector<64x16xf32> to vector<4x16xf32>
    %cst_82 = arith.constant 0.899999976 : f32
    %166 = vector.broadcast %cst_82 : f32 to vector<4x16xf32>
    %167 = arith.mulf %166, %158 : vector<4x16xf32>
    %168 = arith.addf %167, %165 : vector<4x16xf32>
    %cst_83 = arith.constant 1.000000e+00 : f32
    %169 = vector.broadcast %cst_83 : f32 to vector<4x16xf32>
    %170 = arith.cmpf ogt, %158, %169 : vector<4x16xf32>
    %cst_84 = arith.constant 1.000000e+00 : f32
    %171 = vector.broadcast %cst_84 : f32 to vector<4x16xf32>
    %172 = arith.subf %168, %171 : vector<4x16xf32>
    %173 = arith.select %170, %172, %168 : vector<4x16xi1>, vector<4x16xf32>
    %cst_85 = arith.constant 1.000000e+00 : f32
    %174 = vector.broadcast %cst_85 : f32 to vector<4x16xf32>
    %175 = arith.cmpf ogt, %173, %174 : vector<4x16xf32>
    %176 = arith.extui %175 : vector<4x16xi1> to vector<4x16xi32>
    %177 = arith.sitofp %176 : vector<4x16xi32> to vector<4x16xf32>
    %c0_86 = arith.constant 0 : index
    %c48_87 = arith.constant 48 : index
    %178 = vector.load %arg5[%c0_86, %c48_87] : memref<4x128xf32, #tpu.memory_space<vmem>>, vector<4x16xf32>
    tpu.vector_store %arg5[%c0_86, %c48_87], %177 {strides = array<i32>} : memref<4x128xf32, #tpu.memory_space<vmem>>, vector<4x16xf32>,
    %c0_88 = arith.constant 0 : index
    %c48_89 = arith.constant 48 : index
    %179 = vector.load %arg6[%c0_88, %c48_89] : memref<4x128xf32, #tpu.memory_space<vmem>>, vector<4x16xf32>
    tpu.vector_store %arg6[%c0_88, %c48_89], %173 {strides = array<i32>} : memref<4x128xf32, #tpu.memory_space<vmem>>, vector<4x16xf32>,
    %180 = vector.extract_strided_slice %118 {offsets = [32, 0], sizes = [4, 16], strides = [1, 1]} : vector<64x16xf32> to vector<4x16xf32>
    %cst_90 = arith.constant 0.899999976 : f32
    %181 = vector.broadcast %cst_90 : f32 to vector<4x16xf32>
    %182 = arith.mulf %181, %173 : vector<4x16xf32>
    %183 = arith.addf %182, %180 : vector<4x16xf32>
    %cst_91 = arith.constant 1.000000e+00 : f32
    %184 = vector.broadcast %cst_91 : f32 to vector<4x16xf32>
    %185 = arith.cmpf ogt, %173, %184 : vector<4x16xf32>
    %cst_92 = arith.constant 1.000000e+00 : f32
    %186 = vector.broadcast %cst_92 : f32 to vector<4x16xf32>
    %187 = arith.subf %183, %186 : vector<4x16xf32>
    %188 = arith.select %185, %187, %183 : vector<4x16xi1>, vector<4x16xf32>
    %cst_93 = arith.constant 1.000000e+00 : f32
    %189 = vector.broadcast %cst_93 : f32 to vector<4x16xf32>
    %190 = arith.cmpf ogt, %188, %189 : vector<4x16xf32>
    %191 = arith.extui %190 : vector<4x16xi1> to vector<4x16xi32>
    %192 = arith.sitofp %191 : vector<4x16xi32> to vector<4x16xf32>
    %c0_94 = arith.constant 0 : index
    %c64 = arith.constant 64 : index
    %193 = vector.load %arg5[%c0_94, %c64] : memref<4x128xf32, #tpu.memory_space<vmem>>, vector<4x16xf32>
    tpu.vector_store %arg5[%c0_94, %c64], %192 {strides = array<i32>} : memref<4x128xf32, #tpu.memory_space<vmem>>, vector<4x16xf32>,
    %c0_95 = arith.constant 0 : index
    %c64_96 = arith.constant 64 : index
    %194 = vector.load %arg6[%c0_95, %c64_96] : memref<4x128xf32, #tpu.memory_space<vmem>>, vector<4x16xf32>
    tpu.vector_store %arg6[%c0_95, %c64_96], %188 {strides = array<i32>} : memref<4x128xf32, #tpu.memory_space<vmem>>, vector<4x16xf32>,
    %195 = vector.extract_strided_slice %118 {offsets = [40, 0], sizes = [4, 16], strides = [1, 1]} : vector<64x16xf32> to vector<4x16xf32>
    %cst_97 = arith.constant 0.899999976 : f32
    %196 = vector.broadcast %cst_97 : f32 to vector<4x16xf32>
    %197 = arith.mulf %196, %188 : vector<4x16xf32>
    %198 = arith.addf %197, %195 : vector<4x16xf32>
    %cst_98 = arith.constant 1.000000e+00 : f32
    %199 = vector.broadcast %cst_98 : f32 to vector<4x16xf32>
    %200 = arith.cmpf ogt, %188, %199 : vector<4x16xf32>
    %cst_99 = arith.constant 1.000000e+00 : f32
    %201 = vector.broadcast %cst_99 : f32 to vector<4x16xf32>
    %202 = arith.subf %198, %201 : vector<4x16xf32>
    %203 = arith.select %200, %202, %198 : vector<4x16xi1>, vector<4x16xf32>
    %cst_100 = arith.constant 1.000000e+00 : f32
    %204 = vector.broadcast %cst_100 : f32 to vector<4x16xf32>
    %205 = arith.cmpf ogt, %203, %204 : vector<4x16xf32>
    %206 = arith.extui %205 : vector<4x16xi1> to vector<4x16xi32>
    %207 = arith.sitofp %206 : vector<4x16xi32> to vector<4x16xf32>
    %c0_101 = arith.constant 0 : index
    %c80 = arith.constant 80 : index
    %208 = vector.load %arg5[%c0_101, %c80] : memref<4x128xf32, #tpu.memory_space<vmem>>, vector<4x16xf32>
    tpu.vector_store %arg5[%c0_101, %c80], %207 {strides = array<i32>} : memref<4x128xf32, #tpu.memory_space<vmem>>, vector<4x16xf32>,
    %c0_102 = arith.constant 0 : index
    %c80_103 = arith.constant 80 : index
    %209 = vector.load %arg6[%c0_102, %c80_103] : memref<4x128xf32, #tpu.memory_space<vmem>>, vector<4x16xf32>
    tpu.vector_store %arg6[%c0_102, %c80_103], %203 {strides = array<i32>} : memref<4x128xf32, #tpu.memory_space<vmem>>, vector<4x16xf32>,
    %210 = vector.extract_strided_slice %118 {offsets = [48, 0], sizes = [4, 16], strides = [1, 1]} : vector<64x16xf32> to vector<4x16xf32>
    %cst_104 = arith.constant 0.899999976 : f32
    %211 = vector.broadcast %cst_104 : f32 to vector<4x16xf32>
    %212 = arith.mulf %211, %203 : vector<4x16xf32>
    %213 = arith.addf %212, %210 : vector<4x16xf32>
    %cst_105 = arith.constant 1.000000e+00 : f32
    %214 = vector.broadcast %cst_105 : f32 to vector<4x16xf32>
    %215 = arith.cmpf ogt, %203, %214 : vector<4x16xf32>
    %cst_106 = arith.constant 1.000000e+00 : f32
    %216 = vector.broadcast %cst_106 : f32 to vector<4x16xf32>
    %217 = arith.subf %213, %216 : vector<4x16xf32>
    %218 = arith.select %215, %217, %213 : vector<4x16xi1>, vector<4x16xf32>
    %cst_107 = arith.constant 1.000000e+00 : f32
    %219 = vector.broadcast %cst_107 : f32 to vector<4x16xf32>
    %220 = arith.cmpf ogt, %218, %219 : vector<4x16xf32>
    %221 = arith.extui %220 : vector<4x16xi1> to vector<4x16xi32>
    %222 = arith.sitofp %221 : vector<4x16xi32> to vector<4x16xf32>
    %c0_108 = arith.constant 0 : index
    %c96 = arith.constant 96 : index
    %223 = vector.load %arg5[%c0_108, %c96] : memref<4x128xf32, #tpu.memory_space<vmem>>, vector<4x16xf32>
    tpu.vector_store %arg5[%c0_108, %c96], %222 {strides = array<i32>} : memref<4x128xf32, #tpu.memory_space<vmem>>, vector<4x16xf32>,
    %c0_109 = arith.constant 0 : index
    %c96_110 = arith.constant 96 : index
    %224 = vector.load %arg6[%c0_109, %c96_110] : memref<4x128xf32, #tpu.memory_space<vmem>>, vector<4x16xf32>
    tpu.vector_store %arg6[%c0_109, %c96_110], %218 {strides = array<i32>} : memref<4x128xf32, #tpu.memory_space<vmem>>, vector<4x16xf32>,
    %225 = vector.extract_strided_slice %118 {offsets = [56, 0], sizes = [4, 16], strides = [1, 1]} : vector<64x16xf32> to vector<4x16xf32>
    %cst_111 = arith.constant 0.899999976 : f32
    %226 = vector.broadcast %cst_111 : f32 to vector<4x16xf32>
    %227 = arith.mulf %226, %218 : vector<4x16xf32>
    %228 = arith.addf %227, %225 : vector<4x16xf32>
    %cst_112 = arith.constant 1.000000e+00 : f32
    %229 = vector.broadcast %cst_112 : f32 to vector<4x16xf32>
    %230 = arith.cmpf ogt, %218, %229 : vector<4x16xf32>
    %cst_113 = arith.constant 1.000000e+00 : f32
    %231 = vector.broadcast %cst_113 : f32 to vector<4x16xf32>
    %232 = arith.subf %228, %231 : vector<4x16xf32>
    %233 = arith.select %230, %232, %228 : vector<4x16xi1>, vector<4x16xf32>
    %cst_114 = arith.constant 1.000000e+00 : f32
    %234 = vector.broadcast %cst_114 : f32 to vector<4x16xf32>
    %235 = arith.cmpf ogt, %233, %234 : vector<4x16xf32>
    %236 = arith.extui %235 : vector<4x16xi1> to vector<4x16xi32>
    %237 = arith.sitofp %236 : vector<4x16xi32> to vector<4x16xf32>
    %c0_115 = arith.constant 0 : index
    %c112 = arith.constant 112 : index
    %238 = vector.load %arg5[%c0_115, %c112] : memref<4x128xf32, #tpu.memory_space<vmem>>, vector<4x16xf32>
    tpu.vector_store %arg5[%c0_115, %c112], %237 {strides = array<i32>} : memref<4x128xf32, #tpu.memory_space<vmem>>, vector<4x16xf32>,
    %c0_116 = arith.constant 0 : index
    %c112_117 = arith.constant 112 : index
    %239 = vector.load %arg6[%c0_116, %c112_117] : memref<4x128xf32, #tpu.memory_space<vmem>>, vector<4x16xf32>
    tpu.vector_store %arg6[%c0_116, %c112_117], %233 {strides = array<i32>} : memref<4x128xf32, #tpu.memory_space<vmem>>, vector<4x16xf32>,
    return
  }
}

</mosaic_0001>

<bundles_post_ra>
// kernel: tpu_custom_call.1
= control target key start
LH: loop header
LB: loop body
LE: loop exit
PB: predicated region body
PF: predicated region fallthrough
CT: control target
= control target key end

     0   :  { %12 = vsyncpa [#allocation4], 0  ;;  %v673_v1 = vmov 0.0   ;;  %vm674_vm0 = vmmov 0   ;;  %s835_s0 = inlined_call_operand.vmem [shape: f32[4,32], index: 0, kind: input, shape index: {}]   ;;  %s836_s1 = inlined_call_operand.vmem [shape: f32[32,64], index: 1, kind: input, shape index: {}]   ;;  %s837_s2 = inlined_call_operand.vmem [shape: f32[1,64], index: 2, kind: input, shape index: {}]   ;;  %s838_s3 = inlined_call_operand.vmem [shape: f32[64,16], index: 3, kind: input, shape index: {}]   ;;  %s839_s4 = inlined_call_operand.vmem [shape: f32[1,16], index: 4, kind: input, shape index: {}]   ;;  %s840_s5 = inlined_call_operand.hbm [shape: f32[4,128], index: 5, kind: output, shape index: {0}]   ;;  %s841_s6 = inlined_call_operand.hbm [shape: f32[4,128], index: 6, kind: output, shape index: {1}]  }
   0x1   :  { %v28_v0 = vld [vmem:[%s836_s1 + $0x18] sm:$0xff]  ;;  %563 = vmatprep.subr.mxu0 %v673_v1  ;;  %v27_v2 = vld [vmem:[%s836_s1 + $0x10] sm:$0xff]  ;;  %571 = vmatprep.mubr.msk.f32.mxu0 %vm674_vm0, %v673_v1 }
   0x2   :  { %564 = vmatpush3.msra.mxu0 %v28_v0 }
   0x3   :  { %13 = vsyncpa [#allocation6], 0  ;;  %565 = vmatprep.subr.mxu0 %v673_v1  ;;  %v26_v3 = vld [vmem:[%s836_s1 + $0x8] sm:$0xff]  ;;  %v25_v4 = vld [vmem:[%s836_s1] sm:$0xff]  ;;  %vm36_vm1 = vcmask 261120   ;;  %vm119_vm2 = vcmask 523264  }
   0x4   :  { %566 = vmatpush3.msra.mxu0 %v27_v2  ;;  %v24_v5 = vld [vmem:[%s835_s0] sm:$0xf]  ;;  %v117_v6 = vld [vmem:[%s838_s3 + $0x38] sm:$0xff]  ;;  %120 = vst.msk [vmem:[#allocation2] sm:$0xff] %vm119_vm2, %v673_v1  ;;  %121 = vst.msk [vmem:[#allocation2 + $0x8] sm:$0xff] %vm119_vm2, %v673_v1  ;;  %vm135_vm3 = vcmask 519168  }
   0x5   :  { %567 = vmatprep.subr.mxu0 %v673_v1  ;;  %122 = vst.msk [vmem:[#allocation2 + $0x10] sm:$0xff] %vm119_vm2, %v673_v1  ;;  %123 = vst.msk [vmem:[#allocation2 + $0x18] sm:$0xff] %vm119_vm2, %v673_v1  ;;  %602 = vmatprep.subr.mxu1 %v117_v6  ;;  %v116_v7 = vld [vmem:[%s838_s3 + $0x30] sm:$0xff]  ;;  %v115_v8 = vld [vmem:[%s838_s3 + $0x28] sm:$0xff]  ;;  %vm342_vm12 = vcmask 125952   ;;  %s675_s23 = smov 16  }
   0x6   :  { %568 = vmatpush3.msra.mxu0 %v26_v3  ;;  %124 = vst.msk [vmem:[#allocation2 + $0x20] sm:$0xff] %vm119_vm2, %v673_v1  ;;  %125 = vst.msk [vmem:[#allocation2 + $0x28] sm:$0xff] %vm119_vm2, %v673_v1  ;;  %610 = vmatpush3.msra.mxu1 %v117_v6  ;;  %v114_v9 = vld [vmem:[%s838_s3 + $0x20] sm:$0xff]  ;;  %v113_v10 = vld [vmem:[%s838_s3 + $0x18] sm:$0xff]  ;;  %s677_s24 = smov 48   ;;  %s678_s25 = smov 64  }
   0x7   :  { %569 = vmatprep.subr.mxu0 %v673_v1  ;;  %126 = vst.msk [vmem:[#allocation2 + $0x30] sm:$0xff] %vm119_vm2, %v673_v1  ;;  %127 = vst.msk [vmem:[#allocation2 + $0x38] sm:$0xff] %vm119_vm2, %v673_v1  ;;  %603 = vmatprep.subr.mxu1 %v116_v7  ;;  %v112_v11 = vld [vmem:[%s838_s3 + $0x10] sm:$0xff]  ;;  %v111_v12 = vld [vmem:[%s838_s3 + $0x8] sm:$0xff]  ;;  %s679_s26 = smov 80   ;;  %s680_s27 = smov 96  }
   0x8   :  { %570 = vmatpush3.msra.mxu0 %v25_v4  ;;  %611 = vmatpush3.msra.mxu1 %v116_v7  ;;  %v110_v13 = vld [vmem:[%s838_s3] sm:$0xff]  ;;  %s681_s28 = smov 112   ;;  %s682_s29 = smov [#allocation5]  }
   0x9   :  { %572 = vmatmul.mubr.msk.f32.vlgmr.msra.gmra.mxu0 %vm36_vm1, %v24_v5  ;;  %574 = vmatprep.subr.mxu0 %v117_v6  ;;  %v499_v14 = vld [vmem:[%s837_s2] ss:$0 sm:$0xff]  ;;  %s487_s30 = sshll.u32 %s682_s29, 4  ;;  %s683_s7 = smov [#allocation3]   ;;  %s488_s30 = int_to_ptr.vmem [resolvable:$true] %s487_s30 }
   0xa   :  { %575 = vmatpush3.msra.mxu0 %v117_v6  ;;  %604 = vmatprep.subr.mxu1 %v115_v8  ;;  %v809_v63 = vld [vmem:[%s839_s4] ss:$0 sm:$0xff]  ;;  %s676_s4 = smov 32   ;;  %s477_s8 = sshll.u32 %s683_s7, 4  ;;  %s478_s8 = int_to_ptr.vmem [resolvable:$true] %s477_s8 }
   0xb   :  { %576 = vmatprep.subr.mxu0 %v116_v7  ;;  %612 = vmatpush3.msra.mxu1 %v115_v8  ;;  %s629_s0 = scalar_lea.vmem %s488_s30, 64  ;;  %p634_p1 = scmp.lt.s32.totalorder %s488_s30, %s488_s30 }
   0xc   :  { %577 = vmatpush3.msra.mxu0 %v116_v7  ;;  %605 = vmatprep.subr.mxu1 %v114_v9  ;;  %p630_p0 = scmp.ne.s32.totalorder %s488_s30, %s629_s0  ;;  %p635_p2 = scmp.lt.s32.totalorder %s629_s0, %s629_s0 }
   0xd   :  { %578 = vmatprep.subr.mxu0 %v115_v8  ;;  %613 = vmatpush3.msra.mxu1 %v114_v9 }
   0xe   :  { %579 = vmatpush3.msra.mxu0 %v115_v8  ;;  %606 = vmatprep.subr.mxu1 %v113_v10  ;;  %p636_p3 = por %p635_p2, %p634_p1 }
   0xf   :  { %580 = vmatprep.subr.mxu0 %v114_v9  ;;  %614 = vmatpush3.msra.mxu1 %v113_v10 }
  0x10   :  { %581 = vmatpush3.msra.mxu0 %v114_v9  ;;  %607 = vmatprep.subr.mxu1 %v112_v11  ;;  %p637_p4 = pnand %p636_p3, %p630_p0 }
  0x11   :  { %582 = vmatprep.subr.mxu0 %v113_v10  ;;  %615 = vmatpush3.msra.mxu1 %v112_v11 }
  0x12   :  { %583 = vmatpush3.msra.mxu0 %v113_v10  ;;  %608 = vmatprep.subr.mxu1 %v111_v12 }
  0x13   :  { %584 = vmatprep.subr.mxu0 %v112_v11  ;;  %616 = vmatpush3.msra.mxu1 %v111_v12 }
  0x14   :  { %585 = vmatpush3.msra.mxu0 %v112_v11  ;;  %609 = vmatprep.subr.mxu1 %v110_v13 }
  0x15   :  { %586 = vmatprep.subr.mxu0 %v111_v12  ;;  %617 = vmatpush3.msra.mxu1 %v110_v13 }
  0x16   :  { %587 = vmatpush3.msra.mxu0 %v111_v12 }
  0x17   :  { %588 = vmatprep.subr.mxu0 %v110_v13 }
  0x18   :  { %589 = vmatpush3.msra.mxu0 %v110_v13 }
  0xc9   :  { %v106_v15 = vpop.f32.mrf.mxu0 }
  0xca   :  { %v107_v16 = vadd.f32 %v499_v14, %v106_v15 }
  0xcb   :  { %v573_v17 = vpop.f32.mrf.mxu0 }
  0xcc   :  { %v137_v18 = vmul.f32 0.9, %v107_v16  ;;  %vm132_vm4 = vcmp.gt.f32.partialorder %v107_v16, 1.0 }
  0xcd   :  { %v502_v19 = vsel %vm132_vm4, 1.0, %v673_v1 }
  0xce   :  { %v138_v20 = vadd.f32 %v137_v18, %v107_v16  ;;  %136 = vst.msk [vmem:[#allocation2] sm:$0xf] %vm135_vm3, %v502_v19 }
  0xd0   :  { %v503_v21 = vadd.f32 -1.0, %v138_v20 }
  0xd2   :  { %v140_v22 = vsel %vm132_vm4, %v503_v21, %v138_v20 }
  0xd3   :  { %v145_v23 = vmul.f32 0.9, %v140_v22  ;;  %vm141_vm5 = vcmp.gt.f32.partialorder %v140_v22, 1.0 }
  0xd4   :  { %v504_v24 = vsel %vm141_vm5, 1.0, %v673_v1 }
  0xd5   :  { %v193_v25 = vld [vmem:[#allocation2] sm:$0xff]  ;;  %144 = vst.msk [vmem:[#allocation2 + $0x8] sm:$0xf] %vm135_vm3, %v504_v24  ;;  %v146_v26 = vadd.f32 %v145_v23, %v107_v16 }
  0xd6   :  { %590 = vmatprep.mubr.msk.f32.mxu0 %vm119_vm2, %v193_v25 }
  0xd7   :  { %v505_v27 = vadd.f32 -1.0, %v146_v26 }
  0xd9   :  { %v148_v28 = vsel %vm141_vm5, %v505_v27, %v146_v26  ;;  %vm356_vm5 = vcmask 257152  }
  0xda   :  { %vm149_vm6 = vcmp.gt.f32.partialorder %v148_v28, 1.0  ;;  %v153_v29 = vmul.f32 0.9, %v148_v28 }
  0xdb   :  { %v506_v30 = vsel %vm149_vm6, 1.0, %v673_v1 }
  0xdc   :  { %v194_v31 = vld [vmem:[#allocation2 + $0x8] sm:$0xff]  ;;  %152 = vst.msk [vmem:[#allocation2 + $0x10] sm:$0xf] %vm135_vm3, %v506_v30  ;;  %v154_v32 = vadd.f32 %v153_v29, %v107_v16 }
  0xdd   :  { %591 = vmatmul.mubr.msk.f32.vlgmr.msra.gmra.mxu0 %vm119_vm2, %v194_v31 }
  0xde   :  { %v507_v33 = vadd.f32 -1.0, %v154_v32 }
  0xe0   :  { %v156_v34 = vsel %vm149_vm6, %v507_v33, %v154_v32  ;;  %vm374_vm6 = vcmask 388352  }
  0xe1   :  { %v161_v35 = vmul.f32 0.9, %v156_v34  ;;  %vm157_vm7 = vcmp.gt.f32.partialorder %v156_v34, 1.0 }
  0xe2   :  { %v508_v36 = vsel %vm157_vm7, 1.0, %v673_v1 }
  0xe3   :  { %v162_v37 = vadd.f32 %v161_v35, %v107_v16  ;;  %v195_v38 = vld [vmem:[#allocation2 + $0x10] sm:$0xff]  ;;  %160 = vst.msk [vmem:[#allocation2 + $0x18] sm:$0xf] %vm135_vm3, %v508_v36 }
  0xe4   :  { %593 = vmatprep.mubr.msk.f32.mxu1 %vm119_vm2, %v195_v38 }
  0xe5   :  { %v509_v39 = vadd.f32 -1.0, %v162_v37 }
  0xe7   :  { %v164_v40 = vsel %vm157_vm7, %v509_v39, %v162_v37  ;;  %vm392_vm7 = vcmask 519552  }
  0xe8   :  { %vm165_vm8 = vcmp.gt.f32.partialorder %v164_v40, 1.0  ;;  %v169_v41 = vmul.f32 0.9, %v164_v40 }
  0xe9   :  { %v510_v42 = vsel %vm165_vm8, 1.0, %v673_v1 }
  0xea   :  { %v196_v43 = vld [vmem:[#allocation2 + $0x18] sm:$0xff]  ;;  %168 = vst.msk [vmem:[#allocation2 + $0x20] sm:$0xf] %vm135_vm3, %v510_v42  ;;  %v170_v44 = vadd.f32 %v169_v41, %v107_v16 }
  0xeb   :  { %594 = vmatmul.mubr.msk.f32.vlgmr.msra.gmra.mxu1 %vm119_vm2, %v196_v43 }
  0xec   :  { %v511_v45 = vadd.f32 -1.0, %v170_v44 }
  0xee   :  { %v172_v46 = vsel %vm165_vm8, %v511_v45, %v170_v44  ;;  %vm410_vm8 = vcmask 650752  }
  0xef   :  { %vm173_vm9 = vcmp.gt.f32.partialorder %v172_v46, 1.0  ;;  %v177_v47 = vmul.f32 0.9, %v172_v46 }
  0xf0   :  { %v512_v48 = vsel %vm173_vm9, 1.0, %v673_v1 }
  0xf1   :  { %v197_v49 = vld [vmem:[#allocation2 + $0x20] sm:$0xff]  ;;  %176 = vst.msk [vmem:[#allocation2 + $0x28] sm:$0xf] %vm135_vm3, %v512_v48  ;;  %v178_v50 = vadd.f32 %v177_v47, %v107_v16 }
  0xf2   :  { %596 = vmatprep.mubr.msk.f32.mxu1 %vm119_vm2, %v197_v49 }
  0xf3   :  { %v513_v51 = vadd.f32 -1.0, %v178_v50 }
  0xf5   :  { %v180_v52 = vsel %vm173_vm9, %v513_v51, %v178_v50  ;;  %vm428_vm9 = vcmask 781952  }
  0xf6   :  { %vm181_vm10 = vcmp.gt.f32.partialorder %v180_v52, 1.0  ;;  %v185_v53 = vmul.f32 0.9, %v180_v52 }
  0xf7   :  { %v514_v54 = vsel %vm181_vm10, 1.0, %v673_v1 }
  0xf8   :  { %v198_v55 = vld [vmem:[#allocation2 + $0x28] sm:$0xff]  ;;  %184 = vst.msk [vmem:[#allocation2 + $0x30] sm:$0xf] %vm135_vm3, %v514_v54  ;;  %v186_v56 = vadd.f32 %v185_v53, %v107_v16 }
  0xf9   :  { %597 = vmatmul.mubr.msk.f32.gmra.mxu1 %vm119_vm2, %v198_v55 }
  0xfa   :  { %v515_v57 = vadd.f32 -1.0, %v186_v56 }
  0xfc   :  { %v188_v58 = vsel %vm181_vm10, %v515_v57, %v186_v56  ;;  %vm446_vm10 = vcmask 913152  }
  0xfd   :  { %vm189_vm11 = vcmp.gt.f32.partialorder %v188_v58, 1.0 }
  0xfe   :  { %v516_v59 = vsel %vm189_vm11, 1.0, %v673_v1  ;;  %vm464_vm11 = vcmask 1044352  }
  0xff   :  { %v199_v60 = vld [vmem:[#allocation2 + $0x30] sm:$0xff]  ;;  %192 = vst.msk [vmem:[#allocation2 + $0x38] sm:$0xf] %vm135_vm3, %v516_v59 }
 0x100   :  { %599 = vmatprep.mubr.msk.f32.mxu1 %vm119_vm2, %v199_v60 }
 0x106   :  { %v200_v61 = vld [vmem:[#allocation2 + $0x38] sm:$0xff] }
 0x107   :  { %600 = vmatmul.mubr.msk.f32.gmra.mxu1 %vm119_vm2, %v200_v61 }
 0x19d   :  { %v592_v62 = vpop.f32.mrf.mxu0 }
 0x19e   :  { %v303_v3 = vadd.f32 %v592_v62, %v809_v63 }
 0x19f   :  { %v297_v0 = vpop.f32.mrf.mxu0 }
 0x1a0   :  { %v298_v2 = vadd.f32 %v809_v63, %v297_v0 }
 0x1a2   :  { %v345_v4 = vmul.f32 0.9, %v298_v2  ;;  %vm339_vm13 = vcmp.gt.f32.partialorder %v298_v2, 1.0  ;;  %344 = vst.msk [vmem:[#allocation5] sm:$0xf] %vm342_vm12, %v298_v2 }
 0x1a3   :  { %v527_v5 = vsel %vm339_vm13, 1.0, %v673_v1 }
 0x1a4   :  { %v346_v6 = vadd.f32 %v345_v4, %v303_v3  ;;  %343 = vst.msk [vmem:[#allocation3] sm:$0xf] %vm342_vm12, %v527_v5 }
 0x1a6   :  { %v528_v7 = vadd.f32 -1.0, %v346_v6 }
 0x1a8   :  { %v348_v8 = vsel %vm339_vm13, %v528_v7, %v346_v6 }
 0x1a9   :  { %359 = vrot.lane.b32.xlu0 %v348_v8, %s675_s23  ;;  %vm349_vm14 = vcmp.gt.f32.partialorder %v348_v8, 1.0  ;;  %v363_v12 = vmul.f32 0.9, %v348_v8 }
 0x1aa   :  { %v529_v10 = vsel %vm349_vm14, 1.0, %v673_v1 }
 0x1ab   :  { %v595_v9 = vpop.f32.mrf.mxu1 }
 0x1ac   :  { %v313_v17 = vadd.f32 %v595_v9, %v809_v63 }
 0x1ad   :  { %v307_v11 = vpop.f32.mrf.mxu1  ;;  %353 = vrot.lane.b32.xlu0 %v529_v10, %s675_s23 }
 0x1ae   :  { %v308_v13 = vadd.f32 %v809_v63, %v307_v11 }
 0x1b0   :  { %v364_v14 = vadd.f32 %v363_v12, %v308_v13 }
 0x1b2   :  { %v530_v15 = vadd.f32 -1.0, %v364_v14 }
 0x1b4   :  { %v366_v16 = vsel %vm349_vm14, %v530_v15, %v364_v14 }
 0x1b5   :  { %377 = vrot.lane.b32.xlu1 %v366_v16, %s676_s4  ;;  %v381_v18 = vmul.f32 0.9, %v366_v16  ;;  %vm367_vm15 = vcmp.gt.f32.partialorder %v366_v16, 1.0 }
 0x1b6   :  { %v531_v20 = vsel %vm367_vm15, 1.0, %v673_v1 }
 0x1b7   :  { %v382_v19 = vadd.f32 %v381_v18, %v313_v17 }
 0x1b9   :  { %v598_v21 = vpop.f32.mrf.mxu1  ;;  %371 = vrot.lane.b32.xlu1 %v531_v20, %s676_s4  ;;  %v532_v22 = vadd.f32 -1.0, %v382_v19 }
 0x1ba   :  { %v323_v31 = vadd.f32 %v598_v21, %v809_v63 }
 0x1bb   :  { %v317_v23 = vpop.f32.mrf.mxu1  ;;  %v384_v24 = vsel %vm367_vm15, %v532_v22, %v382_v19 }
 0x1bc   :  { %v318_v25 = vadd.f32 %v809_v63, %v317_v23  ;;  %v399_v26 = vmul.f32 0.9, %v384_v24  ;;  %vm385_vm0 = vcmp.gt.f32.partialorder %v384_v24, 1.0 }
 0x1bd   :  { %395 = vrot.lane.b32.xlu1 %v384_v24, %s677_s24  ;;  %v533_v27 = vsel %vm385_vm0, 1.0, %v673_v1 }
 0x1be   :  { %v400_v28 = vadd.f32 %v399_v26, %v318_v25  ;;  %389 = vrot.lane.b32.xlu0 %v533_v27, %s677_s24 }
 0x1c0   :  { %v534_v29 = vadd.f32 -1.0, %v400_v28 }
 0x1c2   :  { %v402_v30 = vsel %vm385_vm0, %v534_v29, %v400_v28 }
 0x1c3   :  { %v417_v32 = vmul.f32 0.9, %v402_v30  ;;  %413 = vrot.lane.b32.xlu1 %v402_v30, %s678_s25  ;;  %vm403_vm1 = vcmp.gt.f32.partialorder %v402_v30, 1.0 }
 0x1c4   :  { %v535_v33 = vsel %vm403_vm1, 1.0, %v673_v1 }
 0x1c5   :  { %v418_v34 = vadd.f32 %v417_v32, %v323_v31  ;;  %407 = vrot.lane.b32.xlu0 %v535_v33, %s678_s25 }
 0x1c7   :  { %v601_v35 = vpop.f32.mrf.mxu1  ;;  %v536_v36 = vadd.f32 -1.0, %v418_v34 }
 0x1c8   :  { %v333_v45 = vadd.f32 %v601_v35, %v809_v63 }
 0x1c9   :  { %v327_v37 = vpop.f32.mrf.mxu1  ;;  %v420_v38 = vsel %vm403_vm1, %v536_v36, %v418_v34 }
 0x1ca   :  { %v328_v39 = vadd.f32 %v809_v63, %v327_v37  ;;  %v435_v40 = vmul.f32 0.9, %v420_v38  ;;  %431 = vrot.lane.b32.xlu1 %v420_v38, %s679_s26  ;;  %vm421_vm2 = vcmp.gt.f32.partialorder %v420_v38, 1.0 }
 0x1cb   :  { %v537_v41 = vsel %vm421_vm2, 1.0, %v673_v1 }
 0x1cc   :  { %v436_v42 = vadd.f32 %v435_v40, %v328_v39  ;;  %425 = vrot.lane.b32.xlu0 %v537_v41, %s679_s26 }
 0x1ce   :  { %v538_v43 = vadd.f32 -1.0, %v436_v42 }
 0x1d0   :  { %v438_v44 = vsel %vm421_vm2, %v538_v43, %v436_v42 }
 0x1d1   :  { %v453_v46 = vmul.f32 0.9, %v438_v44  ;;  %449 = vrot.lane.b32.xlu1 %v438_v44, %s680_s27  ;;  %vm439_vm3 = vcmp.gt.f32.partialorder %v438_v44, 1.0 }
 0x1d2   :  { %v539_v47 = vsel %vm439_vm3, 1.0, %v673_v1 }
 0x1d3   :  { %v454_v48 = vadd.f32 %v453_v46, %v333_v45  ;;  %443 = vrot.lane.b32.xlu0 %v539_v47, %s680_s27 }
 0x1d5   :  { %v540_v49 = vadd.f32 -1.0, %v454_v48 }
 0x1d7   :  { %v456_v50 = vsel %vm439_vm3, %v540_v49, %v454_v48 }
 0x1d8   :  { %467 = vrot.lane.b32.xlu1 %v456_v50, %s681_s28  ;;  %vm457_vm4 = vcmp.gt.f32.partialorder %v456_v50, 1.0 }
 0x1d9   :  { %v541_v51 = vsel %vm457_vm4, 1.0, %v673_v1 }
 0x1da   :  { %461 = vrot.lane.b32.xlu0 %v541_v51, %s681_s28 }
 0x21b   :  { %v360_v52 = vpop.permute.xlu0 %359 }
 0x21c   :  { %362 = vst.msk [vmem:[#allocation5] sm:$0xf] %vm356_vm5, %v360_v52 }
 0x21f   :  { %v354_v53 = vpop.permute.xlu0 %353 }
 0x220   :  { %357 = vst.msk [vmem:[#allocation3] sm:$0xf] %vm356_vm5, %v354_v53 }
 0x227   :  { %v378_v54 = vpop.permute.xlu1 %377 }
 0x228   :  { %380 = vst.msk [vmem:[#allocation5] sm:$0xf] %vm374_vm6, %v378_v54 }
 0x22b   :  { %v372_v55 = vpop.permute.xlu1 %371 }
 0x22c   :  { %375 = vst.msk [vmem:[#allocation3] sm:$0xf] %vm374_vm6, %v372_v55 }
 0x22f   :  { %v396_v56 = vpop.permute.xlu1 %395 }
 0x230   :  { %398 = vst.msk [vmem:[#allocation5] sm:$0xf] %vm392_vm7, %v396_v56  ;;  %v390_v57 = vpop.permute.xlu0 %389 }
 0x231   :  { %393 = vst.msk [vmem:[#allocation3] sm:$0xf] %vm392_vm7, %v390_v57 }
 0x235   :  { %v414_v58 = vpop.permute.xlu1 %413 }
 0x236   :  { %416 = vst.msk [vmem:[#allocation5] sm:$0xf] %vm410_vm8, %v414_v58 }
 0x237   :  { %v408_v1 = vpop.permute.xlu0 %407 }
 0x238   :  { %411 = vst.msk [vmem:[#allocation3] sm:$0xf] %vm410_vm8, %v408_v1 }
 0x23c   :  { %v432_v59 = vpop.permute.xlu1 %431 }
 0x23d   :  { %434 = vst.msk [vmem:[#allocation5] sm:$0xf] %vm428_vm9, %v432_v59 }
 0x23e   :  { %v426_v60 = vpop.permute.xlu0 %425 }
 0x23f   :  { %429 = vst.msk [vmem:[#allocation3] sm:$0xf] %vm428_vm9, %v426_v60 }
 0x243   :  { %v450_v61 = vpop.permute.xlu1 %449 }
 0x244   :  { %452 = vst.msk [vmem:[#allocation5] sm:$0xf] %vm446_vm10, %v450_v61 }
 0x245   :  { %v444_v62 = vpop.permute.xlu0 %443 }
 0x246   :  { %447 = vst.msk [vmem:[#allocation3] sm:$0xf] %vm446_vm10, %v444_v62 }
 0x24a   :  { %v468_v63 = vpop.permute.xlu1 %467 }
 0x24b   :  { %470 = vst.msk [vmem:[#allocation5] sm:$0xf] %vm464_vm11, %v468_v63 }
 0x24c   :  { %v462_v0 = vpop.permute.xlu0 %461 }
 0x24d   :  { %640 = shalt.err (!%p637_p4)
}
 0x24e   :  { %490 = dma.vmem_to_hbm [thread:$0]  %s488_s30, 64, %s841_s6, [#allocation6]   ;;  %465 = vst.msk [vmem:[#allocation3] sm:$0xf] %vm464_vm11, %v462_v0 }
 0x24f   :  { %s649_s10 = scalar_lea.vmem %s478_s8, 64  ;;  %p654_p6 = scmp.lt.s32.totalorder %s478_s8, %s478_s8 }
 0x250   :  { %p650_p5 = scmp.ne.s32.totalorder %s478_s8, %s649_s10  ;;  %p655_p7 = scmp.lt.s32.totalorder %s649_s10, %s649_s10 }
 0x252   :  { %p656_p8 = por %p655_p7, %p654_p6 }
 0x254   :  { %p657_p9 = pnand %p656_p8, %p650_p5 }
 0x256   :  { %660 = shalt.err (!%p657_p9)
}
 0x257   :  { %480 = dma.vmem_to_hbm [thread:$0]  %s478_s8, 64, %s840_s5, [#allocation4]  }
 0x258   :  { %669 = dma.done.wait [#allocation4], 64  }
 0x259   :  { %670 = vsyncadd [#allocation4], 4294967232 }
 0x25a   :  { %671 = dma.done.wait [#allocation6], 64  }
 0x25b   :  { %672 = vsyncadd [#allocation6], 4294967232 }
 0x25c   :  { %497 = vsyncpa [#allocation4], 1 }
 0x25d   :  { %498 = vsyncpa [#allocation6], 1 }

</bundles_post_ra>
